<compile_context>
chip_gen: v7x
topology: tpu7x:2x2x1
jax: 0.10.0
libtpu: 0.0.40
codegen_flags: <defaults>
</compile_context>

<pallas_src>
import jax
import jax.numpy as jnp
from jax import lax
from jax.experimental import pallas as pl
from jax.experimental.pallas import tpu as pltpu


_LANES = 128
_SUBLANES = 8
_MAX_TILE_ROWS = 512   # 512*128*4B = 256 KiB per operand per grid step
_NUM_GROUPS = 2        # megacore split on v7x; harmless (tiny padding) elsewhere


def _round_up(x, m):
    return ((x + m - 1) // m) * m


def _reg_l1_kernel(pred_ref, tgt_ref, mask_ref, part_ref, acc_abs, acc_m):
    # pred_ref/tgt_ref/mask_ref : VMEM (TILE_ROWS, 128) f32, lane-dense tiles
    # part_ref                  : VMEM (1, 8, 128) f32 per-group partials
    # acc_abs/acc_m             : VMEM (TILE_ROWS, 128) f32 accumulators (persist)
    t = pl.program_id(1)

    @pl.when(t == 0)
    def _():
        acc_abs[...] = jnp.zeros_like(acc_abs)
        acc_m[...] = jnp.zeros_like(acc_m)

    p = pred_ref[...]
    tg = tgt_ref[...]
    m = mask_ref[...]
    # Elementwise masked L1 over a full lane-dense tile (VPU only; no per-step
    # cross-lane reduce -- zero padding contributes nothing to either sum).
    acc_abs[...] += jnp.abs(p * m - tg * m)
    acc_m[...] += m

    @pl.when(t == pl.num_programs(1) - 1)
    def _():
        abs_sum = jnp.sum(acc_abs[...])     # single XLU reduce, epilogue only
        m_sum = jnp.sum(acc_m[...])
        row = lax.broadcasted_iota(jnp.int32, (_SUBLANES, _LANES), 0)
        part = jnp.where(row == 0, abs_sum, jnp.where(row == 1, m_sum, 0.0))
        part_ref[0] = part                  # full (8,128) unmasked lane-dense store


@jax.jit
def reg_l1_loss(output, mask, ind, target):
    """output: (B, C, H, W) f32; mask: (B, K); ind: (B, K) int32; target: (B, K, C)."""
    B, C, H, W = output.shape
    K = ind.shape[1]

    # --- glue: NCHW -> (B, H*W, C) and gather only the K needed rows per batch ---
    # TODO(synk): the data-dependent gather itself is left to XLA; a Pallas
    # per-row gather would issue C-wide (tiny) DMAs and be strictly slower.
    feat = jnp.transpose(output, (0, 2, 3, 1)).reshape(B, H * W, C)
    pred = jnp.take_along_axis(
        feat, ind[:, :, None].astype(jnp.int32), axis=1, mode="clip")        # (B, K, C)
    m_exp = jnp.broadcast_to(mask.astype(jnp.float32)[:, :, None], (B, K, C))
    tgt = target.astype(jnp.float32)

    # --- lane-dense layout: flatten to (rows_padded, 128) f32, zero padded ---
    L = B * K * C
    rows = _round_up(max(pl.cdiv(L, _LANES), 1), _SUBLANES)
    # One tile per group when it fits (minimal padding); cap tile size so VMEM
    # stays small and DMAs pipeline when the loss tensor is large.
    tile_rows = min(_MAX_TILE_ROWS,
                    _round_up(pl.cdiv(rows, _NUM_GROUPS), _SUBLANES))
    rows_padded = _round_up(rows, tile_rows * _NUM_GROUPS)
    tiles_per_group = rows_padded // (tile_rows * _NUM_GROUPS)
    pad = rows_padded * _LANES - L

    def to_lane_dense(x):
        flat = x.astype(jnp.float32).reshape(-1)
        flat = jnp.pad(flat, (0, pad))
        return flat.reshape(rows_padded, _LANES)

    pred_ld = to_lane_dense(pred)
    tgt_ld = to_lane_dense(tgt)
    mask_ld = to_lane_dense(m_exp)

    in_blk = pl.BlockSpec((tile_rows, _LANES),
                          lambda g, t: (g * tiles_per_group + t, 0))

    partials = pl.pallas_call(
        _reg_l1_kernel,
        out_shape=jax.ShapeDtypeStruct((_NUM_GROUPS, _SUBLANES, _LANES), jnp.float32),
        grid_spec=pltpu.PrefetchScalarGridSpec(
            num_scalar_prefetch=0,
            grid=(_NUM_GROUPS, tiles_per_group),
            in_specs=[in_blk, in_blk, in_blk],
            out_specs=pl.BlockSpec((1, _SUBLANES, _LANES), lambda g, t: (g, 0, 0)),
            scratch_shapes=[
                pltpu.VMEM((tile_rows, _LANES), jnp.float32),
                pltpu.VMEM((tile_rows, _LANES), jnp.float32),
            ],
        ),
        compiler_params=pltpu.CompilerParams(
            dimension_semantics=("parallel", "arbitrary")),
    )(pred_ld, tgt_ld, mask_ld)

    abs_total = jnp.sum(partials[:, 0, 0])
    mask_total = jnp.sum(partials[:, 1, 0])
    return abs_total / (mask_total + 0.0001)


def _reference(output, mask, ind, target):
    B, C, H, W = output.shape
    K = ind.shape[1]
    feat = jnp.transpose(output, (0, 2, 3, 1)).reshape(B, H * W, C)
    pred = jnp.take_along_axis(feat, ind[:, :, None].astype(jnp.int32), axis=1)
    m = mask[:, :, None].astype(jnp.float32) * jnp.ones((B, K, C), jnp.float32)
    loss = jnp.sum(jnp.abs(pred * m - target * m))
    return loss / (jnp.sum(m) + 0.0001)


if __name__ == "__main__":
    B, C, H, W, K = 2, 4, 16, 16, 8
    key = jax.random.PRNGKey(0)
    k1, k2, k3, k4 = jax.random.split(key, 4)

    output = jax.random.normal(k1, (B, C, H, W), dtype=jnp.float32)
    ind = jax.random.randint(k2, (B, K), 0, H * W, dtype=jnp.int32)
    mask = jax.random.bernoulli(k3, 0.7, (B, K)).astype(jnp.float32)
    target = jax.random.normal(k4, (B, K, C), dtype=jnp.float32)

    loss = jax.block_until_ready(reg_l1_loss(output, mask, ind, target))
    ref = jax.block_until_ready(_reference(output, mask, ind, target))

    assert jnp.allclose(loss, ref, rtol=1e-5, atol=1e-6), (loss, ref)
    print("KERNEL_OK")
</pallas_src>

<mosaic_0001>
module attributes {stable_mosaic.version = 11 : i64} {
  func.func @_reg_l1_kernel(%arg0: i32, %arg1: i32, %arg2: memref<8x128xf32, #tpu.memory_space<vmem>>, %arg3: memref<8x128xf32, #tpu.memory_space<vmem>>, %arg4: memref<8x128xf32, #tpu.memory_space<vmem>>, %arg5: memref<1x8x128xf32, #tpu.memory_space<vmem>>, %arg6: memref<8x128xf32, #tpu.memory_space<vmem>>, %arg7: memref<8x128xf32, #tpu.memory_space<vmem>>) attributes {dimension_semantics = [#tpu.dimension_semantics<parallel>, #tpu.dimension_semantics<arbitrary>], iteration_bounds = array<i64: 2, 1>, scalar_prefetch = 0 : i64, scratch_operands = 2 : i64, tpu.core_type = #tpu.core_type<tc>, window_params = [{transform_indices = @transform_0, window_bounds = array<i64: 8, 128>}, {transform_indices = @transform_1, window_bounds = array<i64: 8, 128>}, {transform_indices = @transform_2, window_bounds = array<i64: 8, 128>}, {transform_indices = @transform_3, window_bounds = array<i64: 1, 8, 128>}]} {
    %c0_i32 = arith.constant 0 : i32
    %0 = arith.cmpi eq, %arg1, %c0_i32 : i32
    %1 = arith.extui %0 : i1 to i32
    %c0_i32_0 = arith.constant 0 : i32
    %2 = arith.cmpi ne, %1, %c0_i32_0 : i32
    scf.if %2 {
      %cst = arith.constant 0.000000e+00 : f32
      %19 = vector.broadcast %cst : f32 to vector<8x128xf32>
      %c0_16 = arith.constant 0 : index
      %c0_17 = arith.constant 0 : index
      %20 = vector.load %arg6[%c0_16, %c0_17] : memref<8x128xf32, #tpu.memory_space<vmem>>, vector<8x128xf32>
      tpu.vector_store %arg6[%c0_16, %c0_17], %19 {strides = array<i32>} : memref<8x128xf32, #tpu.memory_space<vmem>>, vector<8x128xf32>,
      %cst_18 = arith.constant 0.000000e+00 : f32
      %21 = vector.broadcast %cst_18 : f32 to vector<8x128xf32>
      %c0_19 = arith.constant 0 : index
      %c0_20 = arith.constant 0 : index
      %22 = vector.load %arg7[%c0_19, %c0_20] : memref<8x128xf32, #tpu.memory_space<vmem>>, vector<8x128xf32>
      tpu.vector_store %arg7[%c0_19, %c0_20], %21 {strides = array<i32>} : memref<8x128xf32, #tpu.memory_space<vmem>>, vector<8x128xf32>,
    } else {
    }
    %c0 = arith.constant 0 : index
    %c0_1 = arith.constant 0 : index
    %3 = vector.load %arg2[%c0, %c0_1] : memref<8x128xf32, #tpu.memory_space<vmem>>, vector<8x128xf32>
    %c0_2 = arith.constant 0 : index
    %c0_3 = arith.constant 0 : index
    %4 = vector.load %arg3[%c0_2, %c0_3] : memref<8x128xf32, #tpu.memory_space<vmem>>, vector<8x128xf32>
    %c0_4 = arith.constant 0 : index
    %c0_5 = arith.constant 0 : index
    %5 = vector.load %arg4[%c0_4, %c0_5] : memref<8x128xf32, #tpu.memory_space<vmem>>, vector<8x128xf32>
    %c0_6 = arith.constant 0 : index
    %c0_7 = arith.constant 0 : index
    %6 = vector.load %arg6[%c0_6, %c0_7] : memref<8x128xf32, #tpu.memory_space<vmem>>, vector<8x128xf32>
    %7 = arith.mulf %3, %5 : vector<8x128xf32>
    %8 = arith.mulf %4, %5 : vector<8x128xf32>
    %9 = arith.subf %7, %8 : vector<8x128xf32>
    %10 = math.absf %9 : vector<8x128xf32>
    %11 = arith.addf %6, %10 : vector<8x128xf32>
    %c0_8 = arith.constant 0 : index
    %c0_9 = arith.constant 0 : index
    %12 = vector.load %arg6[%c0_8, %c0_9] : memref<8x128xf32, #tpu.memory_space<vmem>>, vector<8x128xf32>
    tpu.vector_store %arg6[%c0_8, %c0_9], %11 {strides = array<i32>} : memref<8x128xf32, #tpu.memory_space<vmem>>, vector<8x128xf32>,
    %c0_10 = arith.constant 0 : index
    %c0_11 = arith.constant 0 : index
    %13 = vector.load %arg7[%c0_10, %c0_11] : memref<8x128xf32, #tpu.memory_space<vmem>>, vector<8x128xf32>
    %14 = arith.addf %13, %5 : vector<8x128xf32>
    %c0_12 = arith.constant 0 : index
    %c0_13 = arith.constant 0 : index
    %15 = vector.load %arg7[%c0_12, %c0_13] : memref<8x128xf32, #tpu.memory_space<vmem>>, vector<8x128xf32>
    tpu.vector_store %arg7[%c0_12, %c0_13], %14 {strides = array<i32>} : memref<8x128xf32, #tpu.memory_space<vmem>>, vector<8x128xf32>,
    %c0_i32_14 = arith.constant 0 : i32
    %16 = arith.cmpi eq, %arg1, %c0_i32_14 : i32
    %17 = arith.extui %16 : i1 to i32
    %c0_i32_15 = arith.constant 0 : i32
    %18 = arith.cmpi ne, %17, %c0_i32_15 : i32
    scf.if %18 {
      %c0_16 = arith.constant 0 : index
      %c0_17 = arith.constant 0 : index
      %19 = vector.load %arg6[%c0_16, %c0_17] : memref<8x128xf32, #tpu.memory_space<vmem>>, vector<8x128xf32>
      %20 = vector.shape_cast %19 : vector<8x128xf32> to vector<1x8x128xf32>
      %cst = arith.constant dense<0.000000e+00> : vector<1xf32>
      %21 = vector.multi_reduction <add>, %20, %cst [1, 2] : vector<1x8x128xf32> to vector<1xf32>
      %22 = vector.shape_cast %21 : vector<1xf32> to vector<1x1x1xf32>
      %23 = vector.extract %22[0, 0, 0] : f32 from vector<1x1x1xf32>
      %c0_18 = arith.constant 0 : index
      %c0_19 = arith.constant 0 : index
      %24 = vector.load %arg7[%c0_18, %c0_19] : memref<8x128xf32, #tpu.memory_space<vmem>>, vector<8x128xf32>
      %25 = vector.shape_cast %24 : vector<8x128xf32> to vector<1x8x128xf32>
      %cst_20 = arith.constant dense<0.000000e+00> : vector<1xf32>
      %26 = vector.multi_reduction <add>, %25, %cst_20 [1, 2] : vector<1x8x128xf32> to vector<1xf32>
      %27 = vector.shape_cast %26 : vector<1xf32> to vector<1x1x1xf32>
      %28 = vector.extract %27[0, 0, 0] : f32 from vector<1x1x1xf32>
      %29 = tpu.iota {dimensions = array<i32: 0>} : vector<8x128xi32>
      %c0_i32_21 = arith.constant 0 : i32
      %30 = vector.broadcast %c0_i32_21 : i32 to vector<8x128xi32>
      %31 = arith.cmpi eq, %29, %30 : vector<8x128xi32>
      %c1_i32 = arith.constant 1 : i32
      %32 = vector.broadcast %c1_i32 : i32 to vector<8x128xi32>
      %33 = arith.cmpi eq, %29, %32 : vector<8x128xi32>
      %cst_22 = arith.constant 0.000000e+00 : f32
      %34 = vector.broadcast %28 : f32 to vector<8x128xf32>
      %35 = vector.broadcast %cst_22 : f32 to vector<8x128xf32>
      %36 = arith.select %33, %34, %35 : vector<8x128xi1>, vector<8x128xf32>
      %37 = vector.broadcast %23 : f32 to vector<8x128xf32>
      %38 = arith.select %31, %37, %36 : vector<8x128xi1>, vector<8x128xf32>
      %c0_23 = arith.constant 0 : index
      %c0_24 = arith.constant 0 : index
      %c0_25 = arith.constant 0 : index
      %39 = vector.load %arg5[%c0_23, %c0_24, %c0_25] : memref<1x8x128xf32, #tpu.memory_space<vmem>>, vector<1x8x128xf32>
      %40 = vector.shape_cast %39 : vector<1x8x128xf32> to vector<8x128xf32>
      %41 = vector.shape_cast %38 : vector<8x128xf32> to vector<1x8x128xf32>
      tpu.vector_store %arg5[%c0_23, %c0_24, %c0_25], %41 {strides = array<i32>} : memref<1x8x128xf32, #tpu.memory_space<vmem>>, vector<1x8x128xf32>,
    } else {
    }
    return
  }
  func.func @transform_0(%arg0: i32, %arg1: i32) -> (i32, i32) {
    %c1_i32 = arith.constant 1 : i32
    %0 = arith.muli %arg0, %c1_i32 : i32
    %1 = arith.addi %0, %arg1 : i32
    %c0_i32 = arith.constant 0 : i32
    %c0_i32_0 = arith.constant 0 : i32
    return %1, %c0_i32 : i32, i32
  }
  func.func @transform_1(%arg0: i32, %arg1: i32) -> (i32, i32) {
    %c1_i32 = arith.constant 1 : i32
    %0 = arith.muli %arg0, %c1_i32 : i32
    %1 = arith.addi %0, %arg1 : i32
    %c0_i32 = arith.constant 0 : i32
    %c0_i32_0 = arith.constant 0 : i32
    return %1, %c0_i32 : i32, i32
  }
  func.func @transform_2(%arg0: i32, %arg1: i32) -> (i32, i32) {
    %c1_i32 = arith.constant 1 : i32
    %0 = arith.muli %arg0, %c1_i32 : i32
    %1 = arith.addi %0, %arg1 : i32
    %c0_i32 = arith.constant 0 : i32
    %c0_i32_0 = arith.constant 0 : i32
    return %1, %c0_i32 : i32, i32
  }
  func.func @transform_3(%arg0: i32, %arg1: i32) -> (i32, i32, i32) {
    %c0_i32 = arith.constant 0 : i32
    %c0_i32_0 = arith.constant 0 : i32
    %c0_i32_1 = arith.constant 0 : i32
    return %arg0, %c0_i32, %c0_i32_0 : i32, i32, i32
  }
}

</mosaic_0001>

<bundles_post_ra>
// kernel: reg_l1_loss.1
= control target key start
LH: loop header
LB: loop body
LE: loop exit
PB: predicated region body
PF: predicated region fallthrough
CT: control target
= control target key end

     0   :  { %s452_s12 = smov 0   ;;  %s454_s13 = smov 0   ;;  %s497_s0 = inlined_call_operand.vmem [shape: f32[16,128], index: 0, kind: input, shape index: {}]   ;;  %s498_s1 = inlined_call_operand.vmem [shape: f32[16,128], index: 1, kind: input, shape index: {}]   ;;  %s499_s2 = inlined_call_operand.vmem [shape: f32[16,128], index: 2, kind: input, shape index: {}]   ;;  %s500_s3 = inlined_call_operand.vmem [shape: f32[2,8,128], index: 3, kind: output, shape index: {}]  }
   0x1   :  { %s456_s14 = smov 0  }
   0x2 LB: > { %s25_s15 = sadd.s32 1, %s426_s13  ;;  %p373_p0 = scmp.ge.s32.totalorder %s430_s14, 1  ;;  %s430_s14 = sphi %s456_s14, %s13_s14   ;;  %s426_s13 = sphi %s454_s13, %s502_s13   ;;  %s422_s12 = sphi %s452_s12, %s501_s12  }
   0x3   : > { %p27_p1 = scmp.ge.s32.totalorder %s25_s15, 2  ;;  %p178_p2 = scmp.lt.s32.totalorder %s430_s14, 3 }
   0x5   : > { %s504_s15 = smov (%p27_p1, %s25_s15), 0  ;;  %p179_p3 = pnand %p373_p0, %p178_p2 }
   0x6   : > { %p212_p4 = scmp.lt.s32.totalorder (!%p179_p3), %s422_s12, 1  ;;  %v275_v21 = vlaneseq (!%p179_p3) }
   0x7   : > { %182 = sbr.rel (%p179_p3) target bundleno = 238 (0xee), region = 32 }
   0x8   : > { %v276_v22 = vshrl.u32 (!%p179_p3), %v275_v21, 7 }
   0xa   : > { %vm278_vm0 = vcmp.eq.s32.totalorder (!%p179_p3), %v276_v22, 1  ;;  %vm277_vm1 = vcmp.eq.s32.totalorder (!%p179_p3), %v276_v22, 0 }
   0xe   : > { %s506_s12 = smov (!%p212_p4, %s422_s12), 1 }
   0xf   : > { %s470_s16 = sshll.u32 %s506_s12, 3 }
  0x10   : > { %s215_s19 = scalar_lea.vmem %s497_s0, %s470_s16  ;;  %s221_s22 = scalar_lea.vmem %s498_s1, %s470_s16 }
  0x11   : > { %s227_s25 = scalar_lea.vmem %s499_s2, %s470_s16  ;;  %v239_v0 = vld [vmem:[%s215_s19] sm:$0xff]  ;;  %s232_s30 = scalar_lea.vmem %s500_s3, %s470_s16 }
  0x12   : > { %v240_v1 = vld [vmem:[%s221_s22] sm:$0xff] }
  0x13   : > { %v241_v2 = vld [vmem:[%s227_s25] sm:$0xff] }
  0x14   : > { %v243_v3 = vmul.f32 %v241_v2, %v239_v0  ;;  %v244_v4 = vmul.f32 %v241_v2, %v240_v1 }
  0x16   : > { %v245_v5 = vsub.f32 %v243_v3, %v244_v4 }
  0x18   : > { %v246_v6 = vand.u32 2147483647, %v245_v5 }
  0x1a   : > { %256 = vadd.xlane.f32.xlu0 %v246_v6 }
  0x1e   : > { %266 = vadd.xlane.f32.xlu0 %v241_v2 }
  0xa7   : > { %v257_v7 = vpop.xlane.xlu0 %256 }
  0xa8   : > { %v258_v8 = vrot.slane %v257_v7, 4 }
  0xaa   : > { %v259_v9 = vadd.f32 %v258_v8, %v257_v7 }
  0xab   : > { %v267_v10 = vpop.xlane.xlu0 %266 }
  0xac   : > { %v260_v11 = vrot.slane %v259_v9, 2  ;;  %v268_v12 = vrot.slane %v267_v10, 4 }
  0xae   : > { %v269_v13 = vadd.f32 %v268_v12, %v267_v10  ;;  %v261_v14 = vadd.f32 %v260_v11, %v259_v9 }
  0xb0   : > { %v270_v15 = vrot.slane %v269_v13, 2  ;;  %v262_v16 = vrot.slane %v261_v14, 1 }
  0xb2   : > { %v271_v17 = vadd.f32 %v270_v15, %v269_v13  ;;  %v263_v18 = vadd.f32 %v262_v16, %v261_v14 }
  0xb4   : > { %380 = vpush %v263_v18  ;;  %v272_v19 = vrot.slane %v271_v17, 1 }
  0xb6   : > { %v273_v20 = vadd.f32 %v272_v19, %v271_v17 }
  0xb8   : > { %382 = vpush %v273_v20 }
  0xe5   : > { %s381_s26 = spop %380 }
  0xe6   : > { %v281_v24 = vstv %s381_s26 }
  0xe9   : > { %s383_s27 = spop %382 }
  0xea   : > { %v279_v23 = vstv %s383_s27 }
  0xeb   : > { %v280_v25 = vsel %vm278_vm0, %v279_v23, 0.0 }
  0xec   : > { %v282_v26 = vsel %vm277_vm1, %v281_v24, %v280_v25 }
  0xed   : > { %283 = vst [vmem:[%s232_s30] sm:$0xff] %v282_v26 }
  0xee PF: > { %s13_s14 = sadd.s32 1, %s430_s14   ;;  %s501_s12 = smov %s426_s13 }
  0xef   : > { %p10_p5 = scmp.ge.s32.totalorder %s13_s14, 4   ;;  %s502_s13 = smov %s504_s15 }
  0xf1   :  { %12 = sbr.rel (!%p10_p5) target bundleno = 2 (0x2), region = 76 }

</bundles_post_ra>
